<compile_context>
chip_gen: v6e
topology: v6e:2x2x1
jax: 0.10.0
libtpu: 0.0.40
codegen_flags: <defaults>
</compile_context>

<pallas_src>
import functools

import jax
import jax.numpy as jnp
from jax.experimental import pallas as pl
from jax.experimental.pallas import tpu as pltpu


# -----------------------------------------------------------------------------
# Phase 1b: batched gating kernel (conv1(+BN folded) -> ReLU -> conv2 -> softmax)
# -----------------------------------------------------------------------------
def _gating_kernel(pooled_ref, w1_ref, s1_ref, w2_ref, b2_ref, att_ref,
                   *, radix, C, fused):
    """All batch elements at once; every per-channel vector is lane-dense.

    pooled_ref : (B, C)                 pooled descriptor (f32)
    w1_ref     : (C, channels)          conv1 block-diag dense * BN scale
    s1_ref     : (1, channels)          folded shift = b1*bn_scale + bn_shift
    w2_ref     : fused:     (channels, radix*C)   (r, c) column order
                 non-fused: (radix, channels, C)
    b2_ref     : fused: (1, radix*C)   non-fused: (radix, 1, C)
    att_ref    : (radix, B, C)          output attention weights (f32)
    """
    p = pooled_ref[...].astype(jnp.float32)                       # (B, C)

    # conv1 (grouped 1x1 -> block-diag dense) with BN + bias folded in.
    h = jnp.dot(p, w1_ref[...], preferred_element_type=jnp.float32)
    h = jnp.maximum(h + s1_ref[...], 0.0)                         # (B, channels)

    if fused:
        # One wide MXU matmul (N = radix*C); logit slices are 128-aligned.
        la = jnp.dot(h, w2_ref[...], preferred_element_type=jnp.float32)
        la = la + b2_ref[...]
        logits = [la[:, r * C:(r + 1) * C] for r in range(radix)]
    else:
        # C not a multiple of 128: keep per-radix matmuls on pre-split weights
        # (avoids non-lane-aligned in-kernel slices of the logits).
        logits = [jnp.dot(h, w2_ref[r], preferred_element_type=jnp.float32)
                  + b2_ref[r]
                  for r in range(radix)]                          # radix x (B, C)

    if radix > 1:
        m = logits[0]
        for r in range(1, radix):
            m = jnp.maximum(m, logits[r])
        exps = [jnp.exp(l - m) for l in logits]
        denom = exps[0]
        for r in range(1, radix):
            denom = denom + exps[r]
        # approx=True -> EUP vrcp slot; introduces a small common relative
        # factor on the softmax weights (covered by the rtol in the test).
        inv = pl.reciprocal(denom, approx=True)                   # (B, C)
        for r in range(radix):
            att_ref[r] = exps[r] * inv
    else:
        att_ref[0] = jax.nn.sigmoid(logits[0])


# -----------------------------------------------------------------------------
# Phase 2: streaming weighted-combine kernel, tiled over (batch, HW tiles)
# -----------------------------------------------------------------------------
def _combine_kernel(att_ref, x_ref, o_ref, *, radix, out_channels, mul_in_f32):
    """One (batch, HW-tile) block per grid step.

    att_ref : (1, radix*C, 1)  per-channel gating weights (f32), (r, c) order
    x_ref   : (1, radix*C, T)  input tile (channels on sublanes, HW on lanes)
    o_ref   : (1, C, T)        output tile

    NOTE: purely per-lane elementwise -> the undefined lanes of the ragged
    (masked) edge tile never influence any stored lane.  Do not add cross-lane
    reductions here without revisiting the unpadded Phase-2 plan.
    """
    C = out_channels
    acc = None
    for r in range(radix):                       # static unroll, radix is small
        xr = x_ref[0, r * C:(r + 1) * C, :]      # (C, T), input dtype
        wr = att_ref[0, r * C:(r + 1) * C, :]    # (C, 1), f32
        if mul_in_f32:
            # f32 inputs, or v5e (no bf16 VALU -> upcast anyway; keeps f32 weights).
            prod = xr.astype(jnp.float32) * wr
        else:
            # bf16 path for v6e/v7x: multiply in x's dtype, accumulate in f32.
            prod = (xr * wr.astype(xr.dtype)).astype(jnp.float32)
        acc = prod if acc is None else acc + prod
    o_ref[0] = acc.astype(o_ref.dtype)


# -----------------------------------------------------------------------------
# Wrapper
# -----------------------------------------------------------------------------
def split_attention_forward(x_nchw, kernel_params, *, radix, groups,
                            lane_tile=1024):
    """x_nchw: (B, radix*out_channels, H, W) -> (B, out_channels, H, W)."""
    del groups  # group structure is already baked into the dense weights
    B, RC, H, W = x_nchw.shape
    C = RC // radix
    HW = H * W

    w1f, s1, w2f, b2f = kernel_params            # folded / fused layouts
    channels = w1f.shape[1]

    # ---- Phase 1a: pooled descriptor (fused XLA reduction, f32 accumulation) -
    pooled = jnp.sum(x_nchw.reshape(B, radix, C, HW), axis=(1, 3),
                     dtype=jnp.float32) * (1.0 / HW)              # (B, C)

    # ---- Phase 1b: gating weights for the whole batch, one Pallas call ------
    fused_conv2 = (C % 128 == 0)
    if fused_conv2:
        w2_arg, b2_arg = w2f, b2f                                 # (ch, RC), (1, RC)
        w2_spec = pl.BlockSpec((channels, RC), lambda i: (0, 0))
        b2_spec = pl.BlockSpec((1, RC), lambda i: (0, 0))
    else:
        w2_arg = w2f.reshape(channels, radix, C).transpose(1, 0, 2)   # (radix, ch, C)
        b2_arg = b2f.reshape(radix, C)[:, None, :]                    # (radix, 1, C)
        w2_spec = pl.BlockSpec((radix, channels, C), lambda i: (0, 0, 0))
        b2_spec = pl.BlockSpec((radix, 1, C), lambda i: (0, 0, 0))

    att = pl.pallas_call(
        functools.partial(_gating_kernel, radix=radix, C=C, fused=fused_conv2),
        out_shape=jax.ShapeDtypeStruct((radix, B, C), jnp.float32),
        grid_spec=pltpu.PrefetchScalarGridSpec(
            num_scalar_prefetch=0,
            grid=(1,),
            in_specs=[
                pl.BlockSpec((B, C), lambda i: (0, 0)),
                pl.BlockSpec((C, channels), lambda i: (0, 0)),
                pl.BlockSpec((1, channels), lambda i: (0, 0)),
                w2_spec,
                b2_spec,
            ],
            out_specs=pl.BlockSpec((radix, B, C), lambda i: (0, 0, 0)),
        ),
        compiler_params=pltpu.CompilerParams(
            dimension_semantics=("arbitrary",)),
    )(pooled, w1f, s1, w2_arg, b2_arg)

    # (radix, B, C) -> (B, radix*C, 1); channel index = r*C + c (tiny array).
    # TODO(synk): emit (B, RC, 1) directly from the gating kernel (needs an
    # in-kernel relayout) to drop this small transpose from the critical path.
    att_col = jnp.transpose(att, (1, 0, 2)).reshape(B, RC, 1)

    # ---- Phase 2: streaming weighted combine on the UNPADDED arrays ---------
    lane = 128
    x_flat = x_nchw.reshape(B, RC, HW)
    itemsize = x_flat.dtype.itemsize

    hw128 = pl.cdiv(HW, lane) * lane
    thw = min(max(lane, (lane_tile // lane) * lane), hw128)
    # Keep the worst-case (triple-buffered input) footprint under a budget that
    # fits v7x's 64 MiB physical VMEM with headroom (v5e/v6e have 128 MiB).
    vmem_budget = 40 * (1 << 20)
    while thw > lane and (RC * thw * itemsize * 3
                          + C * thw * itemsize * 2) > vmem_budget:
        thw = max(lane, ((thw // 2) // lane) * lane)
    n_t = pl.cdiv(HW, thw)

    # Deeper input pipelining only when there are enough HW tiles to use it.
    use_buf3 = n_t >= 3
    x_spec_kwargs = {"pipeline_mode": pl.Buffered(3)} if use_buf3 else {}
    n_buf_x = 3 if use_buf3 else 2

    vmem_need = (RC * thw * itemsize * n_buf_x
                 + C * thw * itemsize * 2
                 + RC * 4 * 2)
    vmem_limit = int(min(60 * (1 << 20),
                         max(16 * (1 << 20), int(1.5 * vmem_need) + (2 << 20))))

    # v5e has no bf16 VALU: multiply in f32 there (same speed, less rounding).
    try:
        kind = jax.devices()[0].device_kind.lower()
    except Exception:  # pragma: no cover - defensive
        kind = ""
    mul_in_f32 = (x_flat.dtype == jnp.float32) or ("v5" in kind)

    cost = pl.CostEstimate(
        flops=2 * radix * C * HW * B,
        transcendentals=0,
        bytes_accessed=B * HW * (RC + C) * itemsize + B * RC * 4,
    )

    # TODO(synk): on v7x with B==1 and few HW tiles, add a C-tile grid axis so
    # both TensorCores get work on the memory-bound combine.
    out = pl.pallas_call(
        functools.partial(_combine_kernel, radix=radix, out_channels=C,
                          mul_in_f32=mul_in_f32),
        out_shape=jax.ShapeDtypeStruct((B, C, HW), x_nchw.dtype),
        grid_spec=pltpu.PrefetchScalarGridSpec(
            num_scalar_prefetch=0,
            grid=(B, n_t),
            in_specs=[
                pl.BlockSpec((1, RC, 1), lambda b, t: (b, 0, 0)),
                pl.BlockSpec((1, RC, thw), lambda b, t: (b, 0, t),
                             **x_spec_kwargs),
            ],
            out_specs=pl.BlockSpec((1, C, thw), lambda b, t: (b, 0, t)),
        ),
        compiler_params=pltpu.CompilerParams(
            dimension_semantics=("parallel", "parallel"),
            vmem_limit_bytes=vmem_limit),
        cost_estimate=cost,
    )(att_col, x_flat)

    return out.reshape(B, C, H, W)


# -----------------------------------------------------------------------------
# Parameter construction (mirrors the PyTorch __init__) + pure-JAX reference
# -----------------------------------------------------------------------------
def make_params(out_channels, radix, groups, reduction=4,
                dtype=jnp.float32, seed=1):
    channels = max(out_channels * radix // reduction, 32)
    channels = channels // 8 * 8

    key = jax.random.PRNGKey(seed)
    k1, k2, k3, k4, k5, k6, k7, k8 = jax.random.split(key, 8)

    in_pg1 = out_channels // groups
    out_pg1 = channels // groups
    # conv1 weight: (channels, out_channels/groups, 1, 1) -> drop the 1x1
    w1 = 0.1 * jax.random.normal(k1, (channels, in_pg1), dtype)
    b1 = 0.1 * jax.random.normal(k2, (channels,), dtype)

    out_total2 = out_channels * radix
    in_pg2 = channels // groups
    out_pg2 = out_total2 // groups
    # conv2 weight: (out_channels*radix, channels/groups, 1, 1)
    w2 = 0.1 * jax.random.normal(k3, (out_total2, in_pg2), dtype)
    b2 = 0.1 * jax.random.normal(k4, (out_total2,), dtype)

    # Inference-mode BatchNorm2d (affine + running stats), eps = 1e-5.
    gamma = 1.0 + 0.1 * jax.random.normal(k5, (channels,), dtype)
    beta = 0.1 * jax.random.normal(k6, (channels,), dtype)
    run_mean = 0.1 * jax.random.normal(k7, (channels,), dtype)
    run_var = jnp.abs(1.0 + 0.1 * jax.random.normal(k8, (channels,), dtype))
    eps = 1e-5
    bn_scale = gamma / jnp.sqrt(run_var + eps)
    bn_shift = beta - run_mean * bn_scale

    # Dense block-diagonal equivalents of the grouped 1x1 convs ((in, out)).
    W1_dense = jnp.zeros((out_channels, channels), dtype)
    for g in range(groups):
        W1_dense = W1_dense.at[g * in_pg1:(g + 1) * in_pg1,
                               g * out_pg1:(g + 1) * out_pg1].set(
            w1[g * out_pg1:(g + 1) * out_pg1, :].T)

    W2_dense = jnp.zeros((channels, out_total2), dtype)
    for g in range(groups):
        W2_dense = W2_dense.at[g * in_pg2:(g + 1) * in_pg2,
                               g * out_pg2:(g + 1) * out_pg2].set(
            w2[g * out_pg2:(g + 1) * out_pg2, :].T)

    # Permute conv2 output channels from group-major (g, r, j) ordering to
    # (r, c) ordering (c = g*cpg + j) so the kernels see contiguous radix
    # blocks of size C.
    cpg = out_channels // groups
    perm = []
    for r in range(radix):
        for g in range(groups):
            for j in range(cpg):
                perm.append(g * radix * cpg + r * cpg + j)
    perm = jnp.array(perm, jnp.int32)

    W2_perm = W2_dense[:, perm]                   # (channels, radix*C), (r, c) cols
    b2_perm = b2[perm]

    # Fold BN (scale/shift) and conv1 bias into the conv1 weights.
    W1_fold = W1_dense * bn_scale[None, :]                       # (C, channels)
    shift1 = (b1 * bn_scale + bn_shift)[None, :]                 # (1, channels)

    kernel_params = (
        W1_fold,                                                 # (C, channels)
        shift1,                                                  # (1, channels)
        W2_perm,                                                 # (channels, radix*C)
        b2_perm[None, :],                                        # (1, radix*C)
    )
    ref_params = (W1_dense, b1, bn_scale, bn_shift, W2_dense, b2)
    return kernel_params, ref_params


def reference_forward(x, ref_params, *, radix, groups):
    """Pure-JAX re-statement of the PyTorch forward (inference-mode BN)."""
    W1, b1, bn_scale, bn_shift, W2, b2 = ref_params
    B, RC, H, W = x.shape
    C = RC // radix
    xr = x.reshape(B, radix, C, H, W)
    s = xr.sum(axis=1).mean(axis=(2, 3))                    # (B, C)
    h = s @ W1 + b1
    h = h * bn_scale + bn_shift
    h = jnp.maximum(h, 0.0)
    w = h @ W2 + b2                                         # (B, radix*C) group-major
    if radix > 1:
        cpg = C // groups
        w = w.reshape(B, groups, radix, cpg).transpose(0, 2, 1, 3)
        w = jax.nn.softmax(w, axis=1)
        w = w.reshape(B, radix, C)
        out = (xr * w[:, :, :, None, None]).sum(axis=1)
    else:
        w = jax.nn.sigmoid(w).reshape(B, 1, C)
        out = (xr * w[:, :, :, None, None]).sum(axis=1)
    return out


if __name__ == "__main__":
    # Module hyper-parameters (small, consistent with the forward pass):
    out_channels, radix, groups = 8, 2, 2
    B, H, W = 2, 16, 16

    key = jax.random.PRNGKey(0)
    x = jax.random.normal(key, (B, out_channels * radix, H, W), jnp.float32)

    kernel_params, ref_params = make_params(out_channels, radix, groups)

    out = split_attention_forward(x, kernel_params, radix=radix, groups=groups)
    out = jax.block_until_ready(out)

    ref = reference_forward(x, ref_params, radix=radix, groups=groups)
    assert out.shape == (B, out_channels, H, W)
    # approx=True softmax reciprocal introduces a small *relative* error on the
    # gating weights; rtol covers it.
    max_err = float(jnp.max(jnp.abs(out - ref)))
    assert jnp.allclose(out, ref, atol=1e-3, rtol=5e-3), max_err

    print("KERNEL_OK")
</pallas_src>

<mosaic_0001>
module attributes {stable_mosaic.version = 11 : i64} {
  func.func @_gating_kernel(%arg0: i32, %arg1: memref<2x8xf32, #tpu.memory_space<vmem>>, %arg2: memref<8x32xf32, #tpu.memory_space<vmem>>, %arg3: memref<1x32xf32, #tpu.memory_space<vmem>>, %arg4: memref<2x32x8xf32, #tpu.memory_space<vmem>>, %arg5: memref<2x1x8xf32, #tpu.memory_space<vmem>>, %arg6: memref<2x2x8xf32, #tpu.memory_space<vmem>>) attributes {dimension_semantics = [#tpu.dimension_semantics<arbitrary>], iteration_bounds = array<i64: 1>, scalar_prefetch = 0 : i64, scratch_operands = 0 : i64, tpu.core_type = #tpu.core_type<tc>, window_params = [{pipeline_mode = #tpu.pipeline_mode<synchronous>, transform_indices = @transform_0, window_bounds = array<i64: 2, 8>}, {pipeline_mode = #tpu.pipeline_mode<synchronous>, transform_indices = @transform_1, window_bounds = array<i64: 8, 32>}, {pipeline_mode = #tpu.pipeline_mode<synchronous>, transform_indices = @transform_2, window_bounds = array<i64: 1, 32>}, {pipeline_mode = #tpu.pipeline_mode<synchronous>, transform_indices = @transform_3, window_bounds = array<i64: 2, 32, 8>}, {pipeline_mode = #tpu.pipeline_mode<synchronous>, transform_indices = @transform_4, window_bounds = array<i64: 2, 1, 8>}, {pipeline_mode = #tpu.pipeline_mode<synchronous>, transform_indices = @transform_5, window_bounds = array<i64: 2, 2, 8>}]} {
    %c0 = arith.constant 0 : index
    %c0_0 = arith.constant 0 : index
    %0 = vector.load %arg1[%c0, %c0_0] : memref<2x8xf32, #tpu.memory_space<vmem>>, vector<2x8xf32>
    %c0_1 = arith.constant 0 : index
    %c0_2 = arith.constant 0 : index
    %1 = vector.load %arg2[%c0_1, %c0_2] : memref<8x32xf32, #tpu.memory_space<vmem>>, vector<8x32xf32>
    %cst = arith.constant dense<0.000000e+00> : vector<2x32xf32>
    %2 = tpu.matmul %0, %1, %cst {dimension_numbers = #tpu.dot_dimension_numbers<[1], [0], [0], [1], [0, 0, 1, 1], [], []>} : vector<2x8xf32>, vector<8x32xf32>, vector<2x32xf32> -> vector<2x32xf32>
    %c0_3 = arith.constant 0 : index
    %c0_4 = arith.constant 0 : index
    %3 = vector.load %arg3[%c0_3, %c0_4] : memref<1x32xf32, #tpu.memory_space<vmem>>, vector<1x32xf32>
    %4 = vector.broadcast %3 : vector<1x32xf32> to vector<2x32xf32>
    %5 = arith.addf %2, %4 : vector<2x32xf32>
    %cst_5 = arith.constant 0.000000e+00 : f32
    %6 = vector.broadcast %cst_5 : f32 to vector<2x32xf32>
    %7 = arith.maximumf %5, %6 : vector<2x32xf32>
    %c0_6 = arith.constant 0 : index
    %c0_7 = arith.constant 0 : index
    %c0_8 = arith.constant 0 : index
    %8 = vector.load %arg4[%c0_6, %c0_7, %c0_8] : memref<2x32x8xf32, #tpu.memory_space<vmem>>, vector<1x32x8xf32>
    %9 = vector.shape_cast %8 : vector<1x32x8xf32> to vector<32x8xf32>
    %cst_9 = arith.constant dense<0.000000e+00> : vector<2x8xf32>
    %10 = tpu.matmul %7, %9, %cst_9 {dimension_numbers = #tpu.dot_dimension_numbers<[1], [0], [0], [1], [0, 0, 1, 1], [], []>} : vector<2x32xf32>, vector<32x8xf32>, vector<2x8xf32> -> vector<2x8xf32>
    %c0_10 = arith.constant 0 : index
    %c0_11 = arith.constant 0 : index
    %c0_12 = arith.constant 0 : index
    %11 = vector.load %arg5[%c0_10, %c0_11, %c0_12] : memref<2x1x8xf32, #tpu.memory_space<vmem>>, vector<1x1x8xf32>
    %12 = vector.shape_cast %11 : vector<1x1x8xf32> to vector<1x8xf32>
    %13 = vector.broadcast %12 : vector<1x8xf32> to vector<2x8xf32>
    %14 = arith.addf %10, %13 : vector<2x8xf32>
    %c1 = arith.constant 1 : index
    %c0_13 = arith.constant 0 : index
    %c0_14 = arith.constant 0 : index
    %15 = vector.load %arg4[%c1, %c0_13, %c0_14] : memref<2x32x8xf32, #tpu.memory_space<vmem>>, vector<1x32x8xf32>
    %16 = vector.shape_cast %15 : vector<1x32x8xf32> to vector<32x8xf32>
    %cst_15 = arith.constant dense<0.000000e+00> : vector<2x8xf32>
    %17 = tpu.matmul %7, %16, %cst_15 {dimension_numbers = #tpu.dot_dimension_numbers<[1], [0], [0], [1], [0, 0, 1, 1], [], []>} : vector<2x32xf32>, vector<32x8xf32>, vector<2x8xf32> -> vector<2x8xf32>
    %c1_16 = arith.constant 1 : index
    %c0_17 = arith.constant 0 : index
    %c0_18 = arith.constant 0 : index
    %18 = vector.load %arg5[%c1_16, %c0_17, %c0_18] : memref<2x1x8xf32, #tpu.memory_space<vmem>>, vector<1x1x8xf32>
    %19 = vector.shape_cast %18 : vector<1x1x8xf32> to vector<1x8xf32>
    %20 = vector.broadcast %19 : vector<1x8xf32> to vector<2x8xf32>
    %21 = arith.addf %17, %20 : vector<2x8xf32>
    %22 = arith.maximumf %14, %21 : vector<2x8xf32>
    %23 = arith.subf %14, %22 : vector<2x8xf32>
    %24 = math.exp %23 : vector<2x8xf32>
    %25 = arith.subf %21, %22 : vector<2x8xf32>
    %26 = math.exp %25 : vector<2x8xf32>
    %27 = arith.addf %24, %26 : vector<2x8xf32>
    %28 = tpu.reciprocal %27 {approx = true} : vector<2x8xf32> -> vector<2x8xf32>
    %29 = arith.mulf %24, %28 : vector<2x8xf32>
    %c0_19 = arith.constant 0 : index
    %c0_20 = arith.constant 0 : index
    %c0_21 = arith.constant 0 : index
    %30 = vector.load %arg6[%c0_19, %c0_20, %c0_21] : memref<2x2x8xf32, #tpu.memory_space<vmem>>, vector<1x2x8xf32>
    %31 = vector.shape_cast %30 : vector<1x2x8xf32> to vector<2x8xf32>
    %32 = vector.shape_cast %29 : vector<2x8xf32> to vector<1x2x8xf32>
    tpu.vector_store %arg6[%c0_19, %c0_20, %c0_21], %32 {strides = array<i32>} : memref<2x2x8xf32, #tpu.memory_space<vmem>>, vector<1x2x8xf32>,
    %33 = arith.mulf %26, %28 : vector<2x8xf32>
    %c1_22 = arith.constant 1 : index
    %c0_23 = arith.constant 0 : index
    %c0_24 = arith.constant 0 : index
    %34 = vector.load %arg6[%c1_22, %c0_23, %c0_24] : memref<2x2x8xf32, #tpu.memory_space<vmem>>, vector<1x2x8xf32>
    %35 = vector.shape_cast %34 : vector<1x2x8xf32> to vector<2x8xf32>
    %36 = vector.shape_cast %33 : vector<2x8xf32> to vector<1x2x8xf32>
    tpu.vector_store %arg6[%c1_22, %c0_23, %c0_24], %36 {strides = array<i32>} : memref<2x2x8xf32, #tpu.memory_space<vmem>>, vector<1x2x8xf32>,
    return
  }
  func.func @transform_0(%arg0: i32) -> (i32, i32) {
    %c0_i32 = arith.constant 0 : i32
    %c0_i32_0 = arith.constant 0 : i32
    %c0_i32_1 = arith.constant 0 : i32
    return %c0_i32, %c0_i32_0 : i32, i32
  }
  func.func @transform_1(%arg0: i32) -> (i32, i32) {
    %c0_i32 = arith.constant 0 : i32
    %c0_i32_0 = arith.constant 0 : i32
    %c0_i32_1 = arith.constant 0 : i32
    return %c0_i32, %c0_i32_0 : i32, i32
  }
  func.func @transform_2(%arg0: i32) -> (i32, i32) {
    %c0_i32 = arith.constant 0 : i32
    %c0_i32_0 = arith.constant 0 : i32
    %c0_i32_1 = arith.constant 0 : i32
    return %c0_i32, %c0_i32_0 : i32, i32
  }
  func.func @transform_3(%arg0: i32) -> (i32, i32, i32) {
    %c0_i32 = arith.constant 0 : i32
    %c0_i32_0 = arith.constant 0 : i32
    %c0_i32_1 = arith.constant 0 : i32
    %c0_i32_2 = arith.constant 0 : i32
    return %c0_i32, %c0_i32_0, %c0_i32_1 : i32, i32, i32
  }
  func.func @transform_4(%arg0: i32) -> (i32, i32, i32) {
    %c0_i32 = arith.constant 0 : i32
    %c0_i32_0 = arith.constant 0 : i32
    %c0_i32_1 = arith.constant 0 : i32
    %c0_i32_2 = arith.constant 0 : i32
    return %c0_i32, %c0_i32_0, %c0_i32_1 : i32, i32, i32
  }
  func.func @transform_5(%arg0: i32) -> (i32, i32, i32) {
    %c0_i32 = arith.constant 0 : i32
    %c0_i32_0 = arith.constant 0 : i32
    %c0_i32_1 = arith.constant 0 : i32
    %c0_i32_2 = arith.constant 0 : i32
    return %c0_i32, %c0_i32_0, %c0_i32_1 : i32, i32, i32
  }
}

</mosaic_0001>

<bundles_post_ra>
// kernel: tpu_custom_call.1
= control target key start
LH: loop header
LB: loop body
LE: loop exit
PB: predicated region body
PF: predicated region fallthrough
CT: control target
= control target key end

     0   :  { %vm30_vm0 = vcmask 64512   ;;  %v387_v2 = vmov 0.0   ;;  %vm388_vm1 = vmmov 0   ;;  %s464_s0 = inlined_call_operand.vmem [shape: f32[2,8], index: 0, kind: input, shape index: {}]   ;;  %s465_s1 = inlined_call_operand.vmem [shape: f32[8,32], index: 1, kind: input, shape index: {}]   ;;  %s466_s2 = inlined_call_operand.vmem [shape: f32[1,32], index: 2, kind: input, shape index: {}]   ;;  %s467_s3 = inlined_call_operand.vmem [shape: f32[2,32,8], index: 3, kind: input, shape index: {}]   ;;  %s468_s4 = inlined_call_operand.vmem [shape: f32[2,1,8], index: 4, kind: input, shape index: {}]   ;;  %s469_s5 = inlined_call_operand.hbm [shape: f32[2,2,8], index: 5, kind: output, shape index: {}]  }
   0x1   :  { %v22_v0 = vld [vmem:[%s465_s1] sm:$0xff]  ;;  %327 = vmatprep.subr.mxu0 %v387_v2  ;;  %329 = vmatprep.mubr.msk.f32.mxu0 %vm388_vm1, %v387_v2  ;;  %v108_v3 = vld [vmem:[%s467_s3 + $0x18] sm:$0xff] }
   0x2   :  { %v21_v1 = vld [vmem:[%s464_s0] sm:$0x3]  ;;  %v311_v4 = vld [vmem:[%s467_s3 + $0x38] sm:$0xff]  ;;  %328 = vmatpush3.msra.mxu0 %v22_v0  ;;  %332 = vmatprep.subr.mxu1 %v387_v2 }
   0x3   :  { %10 = vsyncpa [#allocation3], 0  ;;  %330 = vmatmul.mubr.msk.f32.vlgmr.msra.gmra.mxu0 %vm30_vm0, %v21_v1  ;;  %343 = vmatprep.subr.mxu0 %v387_v2  ;;  %v107_v5 = vld [vmem:[%s467_s3 + $0x10] sm:$0xff]  ;;  %v106_v7 = vld [vmem:[%s467_s3 + $0x8] sm:$0xff]  ;;  %vm116_vm2 = vcmask 261120   ;;  %vm283_vm3 = vcmask 58368  }
   0x4   :  { %333 = vmatpush3.msra.mxu1 %v108_v3  ;;  %344 = vmatpush3.msra.mxu0 %v311_v4  ;;  %v310_v6 = vld [vmem:[%s467_s3 + $0x30] sm:$0xff]  ;;  %v309_v8 = vld [vmem:[%s467_s3 + $0x28] sm:$0xff]  ;;  %v105_v9 = vld [vmem:[%s467_s3] sm:$0xff] }
   0x5   :  { %334 = vmatprep.subr.mxu1 %v387_v2  ;;  %345 = vmatprep.subr.mxu0 %v387_v2  ;;  %v308_v10 = vld [vmem:[%s467_s3 + $0x20] sm:$0xff] }
   0x6   :  { %340 = vmatprep.mubr.msk.f32.mxu1 %vm388_vm1, %v387_v2  ;;  %351 = vmatprep.mubr.msk.f32.mxu0 %vm388_vm1, %v387_v2  ;;  %v304_v11 = vld [vmem:[%s466_s2] ss:$0 sm:$0xff]  ;;  %v313_v17 = vld [vmem:[%s468_s4 + $0x1] ss:$0 sm:$0xff]  ;;  %s389_s2 = smov [#allocation2]  }
   0x7   :  { %335 = vmatpush3.msra.mxu1 %v107_v5  ;;  %346 = vmatpush3.msra.mxu0 %v310_v6  ;;  %v306_v16 = vld [vmem:[%s468_s4] ss:$0 sm:$0xff]  ;;  %s293_s3 = sshll.u32 %s389_s2, 4  ;;  %s294_s3 = int_to_ptr.vmem [resolvable:$true] %s293_s3 }
   0x8   :  { %336 = vmatprep.subr.mxu1 %v387_v2  ;;  %347 = vmatprep.subr.mxu0 %v387_v2  ;;  %s365_s4 = scalar_lea.vmem %s294_s3, 64  ;;  %p370_p1 = scmp.lt.s32.totalorder %s294_s3, %s294_s3 }
   0x9   :  { %337 = vmatpush3.msra.mxu1 %v106_v7  ;;  %348 = vmatpush3.msra.mxu0 %v309_v8  ;;  %p366_p0 = scmp.ne.s32.totalorder %s294_s3, %s365_s4  ;;  %p371_p2 = scmp.lt.s32.totalorder %s365_s4, %s365_s4 }
   0xa   :  { %338 = vmatprep.subr.mxu1 %v387_v2  ;;  %349 = vmatprep.subr.mxu0 %v387_v2 }
   0xb   :  { %339 = vmatpush3.msra.mxu1 %v105_v9  ;;  %350 = vmatpush3.msra.mxu0 %v308_v10  ;;  %p372_p3 = por %p371_p2, %p370_p1 }
   0xd   :  { %p373_p4 = pnand %p372_p3, %p366_p0 }
  0xc3   :  { %v100_v12 = vpop.f32.mrf.mxu0 }
  0xc4   :  { %v101_v13 = vadd.f32 %v304_v11, %v100_v12 }
  0xc5   :  { %v331_v14 = vpop.f32.mrf.mxu0 }
  0xc6   :  { %v104_v15 = vmax.f32 %v101_v13, 0.0 }
  0xc8   :  { %341 = vmatmul.mubr.msk.f32.vlgmr.msra.gmra.mxu1 %vm116_vm2, %v104_v15  ;;  %352 = vmatmul.mubr.msk.f32.vlgmr.msra.gmra.mxu0 %vm116_vm2, %v104_v15 }
 0x188   :  { %v186_v18 = vpop.f32.mrf.mxu1  ;;  %v269_v19 = vpop.f32.mrf.mxu0 }
 0x189   :  { %v187_v20 = vadd.f32 %v306_v16, %v186_v18  ;;  %v270_v21 = vadd.f32 %v313_v17, %v269_v19 }
 0x18a   :  { %v342_v22 = vpop.f32.mrf.mxu1  ;;  %v353_v23 = vpop.f32.mrf.mxu0 }
 0x18b   :  { %v273_v24 = vmax.f32 %v187_v20, %v270_v21 }
 0x18d   :  { %v274_v25 = vsub.f32 %v187_v20, %v273_v24  ;;  %v277_v26 = vsub.f32 %v270_v21, %v273_v24 }
 0x18f   :  { %v275_v27 = vmul.f32 1.442695, %v274_v25  ;;  %v278_v28 = vmul.f32 1.442695, %v277_v26 }
 0x191   :  { %359 = vpow2.f32 %v275_v27 }
 0x192   :  { %361 = vpow2.f32 %v278_v28 }
 0x19e   :  { %v360_v29 = vpop.eup %359 }
 0x19f   :  { %v362_v30 = vpop.eup %361 }
 0x1a0   :  { %v280_v31 = vadd.f32 %v362_v30, %v360_v29 }
 0x1a2   :  { %363 = vrcp.f32 %v280_v31 }
 0x1af   :  { %v364_v32 = vpop.eup %363 }
 0x1b0   :  { %v282_v33 = vmul.f32 %v364_v32, %v360_v29  ;;  %v285_v34 = vmul.f32 %v364_v32, %v362_v30 }
 0x1b2   :  { %284 = vst.msk [vmem:[#allocation2] sm:$0x3] %vm283_vm3, %v282_v33  ;;  %287 = vst.msk [vmem:[#allocation2 + $0x2] sm:$0x3] %vm283_vm3, %v285_v34 }
 0x1b3   :  { %376 = shalt.err (!%p373_p4)
}
 0x1b4   :  { %s390_s17 = smov 32   ;;  %s391_s18 = smov 2  }
 0x1b5   :  { %299 = dma.vmem_to_hbm [thread:$0]  %s294_s3, 64, %s469_s5, [#allocation3], %s390_s17, %s390_s17, %s391_s18  }
 0x1b6   :  { %385 = dma.done.wait [#allocation3], 64  }
 0x1b7   :  { %386 = vsyncadd [#allocation3], 4294967232 }
 0x1b8   :  { %303 = vsyncpa [#allocation3], 1 }

</bundles_post_ra>
